<compile_context>
chip_gen: v5e
topology: v5e:2x2
jax: 0.10.0
libtpu: 0.0.40
codegen_flags: <defaults>
</compile_context>

<pallas_src>
import math

import jax
import jax.numpy as jnp
from jax.experimental import pallas as pl
from jax.experimental.pallas import tpu as pltpu

C_IN = 32
C_OUT = 6          # 1 (score) + 4 (loc) + 1 (angle)
SCOPE = 512.0


def _head_kernel(x_ref, w_ref, b_ref, score_ref, geo_ref):
    # x_ref: (32, tm)   w_ref: (6, 32)   b_ref: (6, 1)
    # score_ref: (1, tm)   geo_ref: (5, tm)
    y = jnp.dot(
        w_ref[...], x_ref[...],
        preferred_element_type=jnp.float32,
        precision=jax.lax.Precision.HIGHEST,
    )
    s = jax.nn.sigmoid(y + b_ref[...])                      # (6, tm)

    # score = sigmoid(y0)
    score_ref[...] = s[0:1, :].astype(score_ref.dtype)

    # geo rows 0..3: loc = sigmoid * 512 ; row 4: angle = sigmoid*pi - pi/2
    row = jax.lax.broadcasted_iota(jnp.int32, (5, 1), 0)
    scale = jnp.where(row < 4, SCOPE, math.pi).astype(jnp.float32)
    shift = jnp.where(row < 4, 0.0, -math.pi / 2.0).astype(jnp.float32)
    geo_ref[...] = (s[1:6, :] * scale + shift).astype(geo_ref.dtype)


def _pick_tile(hw_pad, tm_max):
    """Largest multiple of 128 that divides hw_pad, capped at tm_max."""
    best = 128
    t = 128
    cap = min(hw_pad, tm_max)
    while t <= cap:
        if hw_pad % t == 0:
            best = t
        t += 128
    return best


def east_output_head(x_nchw, w, b, *, tm_max=2048):
    """x_nchw: (N, 32, H, W) float32.  Returns (score (N,1,H,W), geo (N,5,H,W))."""
    N, C, H, W = x_nchw.shape
    assert C == C_IN
    hw = H * W
    hw_pad = ((hw + 127) // 128) * 128

    x = x_nchw.reshape(N, C_IN, hw).astype(jnp.float32)     # view, no transpose
    if hw_pad != hw:
        # Rare fallback: EAST feature maps (H/4 x W/4) are normally already a
        # multiple of 128, so this pad (an extra HBM copy) is not hit.
        x = jnp.pad(x, ((0, 0), (0, 0), (0, hw_pad - hw)))

    tm = _pick_tile(hw_pad, tm_max)
    grid = (N, hw_pad // tm)

    w2 = w.reshape(C_OUT, C_IN).astype(jnp.float32)
    b2 = b.reshape(C_OUT, 1).astype(jnp.float32)

    score, geo = pl.pallas_call(
        _head_kernel,
        out_shape=(
            jax.ShapeDtypeStruct((N, 1, hw_pad), jnp.float32),
            jax.ShapeDtypeStruct((N, 5, hw_pad), jnp.float32),
        ),
        grid_spec=pltpu.PrefetchScalarGridSpec(
            num_scalar_prefetch=0,
            grid=grid,
            in_specs=[
                pl.BlockSpec((None, C_IN, tm), lambda n, i: (n, 0, i)),
                pl.BlockSpec((C_OUT, C_IN), lambda n, i: (0, 0)),
                pl.BlockSpec((C_OUT, 1), lambda n, i: (0, 0)),
            ],
            out_specs=[
                pl.BlockSpec((None, 1, tm), lambda n, i: (n, 0, i)),
                pl.BlockSpec((None, 5, tm), lambda n, i: (n, 0, i)),
            ],
        ),
        compiler_params=pltpu.CompilerParams(
            dimension_semantics=("parallel", "parallel")),
    )(x, w2, b2)

    if hw_pad != hw:
        score = score[:, :, :hw]
        geo = geo[:, :, :hw]
    return score.reshape(N, 1, H, W), geo.reshape(N, 5, H, W)


def init_params(key):
    """Deterministic kaiming_normal(fan_out, relu) init of the three 1x1 convs,
    fused into one (6, 32) weight. Biases are zero (as in the torch module)."""
    k1, k2, k3 = jax.random.split(key, 3)
    # fan_out for a 1x1 conv = out_channels ; std = sqrt(2 / fan_out)
    w1 = jax.random.normal(k1, (1, C_IN), jnp.float32) * math.sqrt(2.0 / 1.0)
    w2 = jax.random.normal(k2, (4, C_IN), jnp.float32) * math.sqrt(2.0 / 4.0)
    w3 = jax.random.normal(k3, (1, C_IN), jnp.float32) * math.sqrt(2.0 / 1.0)
    w = jnp.concatenate([w1, w2, w3], axis=0)   # (6, 32) rows: score, loc*4, angle
    b = jnp.zeros((C_OUT,), jnp.float32)
    return w, b


def reference(x_nchw, w, b):
    """Pure-JAX reference of the torch forward for a sanity check."""
    y = jnp.einsum("oc,nchw->nohw", w, x_nchw,
                   precision=jax.lax.Precision.HIGHEST)
    y = y + b[None, :, None, None]
    s = jax.nn.sigmoid(y)
    score = s[:, 0:1]
    loc = s[:, 1:5] * SCOPE
    angle = (s[:, 5:6] - 0.5) * math.pi
    geo = jnp.concatenate([loc, angle], axis=1)
    return score, geo


if __name__ == "__main__":
    key = jax.random.PRNGKey(0)
    kx, kp = jax.random.split(key)

    # small deterministic input, NCHW as in PyTorch
    x = jax.random.normal(kx, (2, 32, 16, 16), jnp.float32)
    w, b = init_params(kp)

    score, geo = east_output_head(x, w, b)
    score, geo = jax.block_until_ready((score, geo))

    score_ref, geo_ref = reference(x, w, b)
    assert score.shape == (2, 1, 16, 16) and geo.shape == (2, 5, 16, 16)
    assert jnp.allclose(score, score_ref, atol=1e-5, rtol=1e-5)
    assert jnp.allclose(geo, geo_ref, atol=1e-4, rtol=1e-5)

    print("KERNEL_OK")
</pallas_src>

<mosaic_0001>
module attributes {stable_mosaic.version = 11 : i64} {
  func.func @_head_kernel(%arg0: i32, %arg1: i32, %arg2: memref<1x32x256xf32, #tpu.memory_space<vmem>>, %arg3: memref<6x32xf32, #tpu.memory_space<vmem>>, %arg4: memref<6x1xf32, #tpu.memory_space<vmem>>, %arg5: memref<1x1x256xf32, #tpu.memory_space<vmem>>, %arg6: memref<1x5x256xf32, #tpu.memory_space<vmem>>) attributes {dimension_semantics = [#tpu.dimension_semantics<parallel>, #tpu.dimension_semantics<parallel>], iteration_bounds = array<i64: 2, 1>, scalar_prefetch = 0 : i64, scratch_operands = 0 : i64, tpu.core_type = #tpu.core_type<tc>, window_params = [{transform_indices = @transform_0, window_bounds = array<i64: 1, 32, 256>}, {pipeline_mode = #tpu.pipeline_mode<synchronous>, transform_indices = @transform_1, window_bounds = array<i64: 6, 32>}, {pipeline_mode = #tpu.pipeline_mode<synchronous>, transform_indices = @transform_2, window_bounds = array<i64: 6, 1>}, {transform_indices = @transform_3, window_bounds = array<i64: 1, 1, 256>}, {transform_indices = @transform_4, window_bounds = array<i64: 1, 5, 256>}]} {
    %c0 = arith.constant 0 : index
    %c0_0 = arith.constant 0 : index
    %0 = vector.load %arg3[%c0, %c0_0] : memref<6x32xf32, #tpu.memory_space<vmem>>, vector<6x32xf32>
    %c0_1 = arith.constant 0 : index
    %c0_2 = arith.constant 0 : index
    %c0_3 = arith.constant 0 : index
    %1 = vector.load %arg2[%c0_1, %c0_2, %c0_3] : memref<1x32x256xf32, #tpu.memory_space<vmem>>, vector<1x32x256xf32>
    %2 = vector.shape_cast %1 : vector<1x32x256xf32> to vector<32x256xf32>
    %cst = arith.constant dense<0.000000e+00> : vector<6x256xf32>
    %3 = tpu.matmul %0, %2, %cst {dimension_numbers = #tpu.dot_dimension_numbers<[1], [0], [0], [1], [0, 0, 1, 1], [], []>, precision = #tpu.contract_precision<fp32>} : vector<6x32xf32>, vector<32x256xf32>, vector<6x256xf32> -> vector<6x256xf32>
    %c0_4 = arith.constant 0 : index
    %c0_5 = arith.constant 0 : index
    %4 = vector.load %arg4[%c0_4, %c0_5] : memref<6x1xf32, #tpu.memory_space<vmem>>, vector<6x1xf32>
    %5 = vector.broadcast %4 : vector<6x1xf32> to vector<6x256xf32>
    %6 = arith.addf %3, %5 : vector<6x256xf32>
    %7 = arith.negf %6 : vector<6x256xf32>
    %8 = math.exp %7 : vector<6x256xf32>
    %cst_6 = arith.constant 1.000000e+00 : f32
    %9 = vector.broadcast %cst_6 : f32 to vector<6x256xf32>
    %10 = arith.addf %9, %8 : vector<6x256xf32>
    %11 = arith.divf %9, %10 : vector<6x256xf32>
    %12 = vector.extract_strided_slice %11 {offsets = [0, 0], sizes = [1, 256], strides = [1, 1]} : vector<6x256xf32> to vector<1x256xf32>
    %c0_7 = arith.constant 0 : index
    %c0_8 = arith.constant 0 : index
    %c0_9 = arith.constant 0 : index
    %13 = vector.load %arg5[%c0_7, %c0_8, %c0_9] : memref<1x1x256xf32, #tpu.memory_space<vmem>>, vector<1x1x256xf32>
    %14 = vector.shape_cast %13 : vector<1x1x256xf32> to vector<1x256xf32>
    %15 = vector.shape_cast %12 : vector<1x256xf32> to vector<1x1x256xf32>
    tpu.vector_store %arg5[%c0_7, %c0_8, %c0_9], %15 {strides = array<i32>} : memref<1x1x256xf32, #tpu.memory_space<vmem>>, vector<1x1x256xf32>,
    %16 = tpu.iota {dimensions = array<i32: 0>} : vector<5x1xi32>
    %c4_i32 = arith.constant 4 : i32
    %17 = vector.broadcast %c4_i32 : i32 to vector<5x1xi32>
    %18 = arith.cmpi slt, %16, %17 : vector<5x1xi32>
    %cst_10 = arith.constant 5.120000e+02 : f32
    %cst_11 = arith.constant 3.14159274 : f32
    %19 = vector.broadcast %cst_10 : f32 to vector<5x1xf32>
    %20 = vector.broadcast %cst_11 : f32 to vector<5x1xf32>
    %21 = arith.select %18, %19, %20 : vector<5x1xi1>, vector<5x1xf32>
    %c4_i32_12 = arith.constant 4 : i32
    %22 = vector.broadcast %c4_i32_12 : i32 to vector<5x1xi32>
    %23 = arith.cmpi slt, %16, %22 : vector<5x1xi32>
    %cst_13 = arith.constant 0.000000e+00 : f32
    %cst_14 = arith.constant -1.57079637 : f32
    %24 = vector.broadcast %cst_13 : f32 to vector<5x1xf32>
    %25 = vector.broadcast %cst_14 : f32 to vector<5x1xf32>
    %26 = arith.select %23, %24, %25 : vector<5x1xi1>, vector<5x1xf32>
    %27 = vector.extract_strided_slice %11 {offsets = [1, 0], sizes = [5, 256], strides = [1, 1]} : vector<6x256xf32> to vector<5x256xf32>
    %28 = vector.broadcast %21 : vector<5x1xf32> to vector<5x256xf32>
    %29 = arith.mulf %27, %28 : vector<5x256xf32>
    %30 = vector.broadcast %26 : vector<5x1xf32> to vector<5x256xf32>
    %31 = arith.addf %29, %30 : vector<5x256xf32>
    %c0_15 = arith.constant 0 : index
    %c0_16 = arith.constant 0 : index
    %c0_17 = arith.constant 0 : index
    %32 = vector.load %arg6[%c0_15, %c0_16, %c0_17] : memref<1x5x256xf32, #tpu.memory_space<vmem>>, vector<1x5x256xf32>
    %33 = vector.shape_cast %32 : vector<1x5x256xf32> to vector<5x256xf32>
    %34 = vector.shape_cast %31 : vector<5x256xf32> to vector<1x5x256xf32>
    tpu.vector_store %arg6[%c0_15, %c0_16, %c0_17], %34 {strides = array<i32>} : memref<1x5x256xf32, #tpu.memory_space<vmem>>, vector<1x5x256xf32>,
    return
  }
  func.func @transform_0(%arg0: i32, %arg1: i32) -> (i32, i32, i32) {
    %c0_i32 = arith.constant 0 : i32
    %c0_i32_0 = arith.constant 0 : i32
    return %arg0, %c0_i32, %arg1 : i32, i32, i32
  }
  func.func @transform_1(%arg0: i32, %arg1: i32) -> (i32, i32) {
    %c0_i32 = arith.constant 0 : i32
    %c0_i32_0 = arith.constant 0 : i32
    %c0_i32_1 = arith.constant 0 : i32
    return %c0_i32, %c0_i32_0 : i32, i32
  }
  func.func @transform_2(%arg0: i32, %arg1: i32) -> (i32, i32) {
    %c0_i32 = arith.constant 0 : i32
    %c0_i32_0 = arith.constant 0 : i32
    %c0_i32_1 = arith.constant 0 : i32
    return %c0_i32, %c0_i32_0 : i32, i32
  }
  func.func @transform_3(%arg0: i32, %arg1: i32) -> (i32, i32, i32) {
    %c0_i32 = arith.constant 0 : i32
    %c0_i32_0 = arith.constant 0 : i32
    return %arg0, %c0_i32, %arg1 : i32, i32, i32
  }
  func.func @transform_4(%arg0: i32, %arg1: i32) -> (i32, i32, i32) {
    %c0_i32 = arith.constant 0 : i32
    %c0_i32_0 = arith.constant 0 : i32
    return %arg0, %c0_i32, %arg1 : i32, i32, i32
  }
}

</mosaic_0001>

<bundles_post_ra>
// kernel: tpu_custom_call.1
= control target key start
LH: loop header
LB: loop body
LE: loop exit
PB: predicated region body
PF: predicated region fallthrough
CT: control target
= control target key end

     0   :  { %10 = vsyncpa [#allocation3], 0  ;;  %s1333_s0 = inlined_call_operand.hbm [shape: f32[2,32,256], index: 0, kind: input, shape index: {}]   ;;  %s1334_s1 = inlined_call_operand.vmem [shape: f32[6,32], index: 1, kind: input, shape index: {}]   ;;  %s1335_s2 = inlined_call_operand.vmem [shape: f32[6,1], index: 2, kind: input, shape index: {}]   ;;  %s1336_s3 = inlined_call_operand.hbm [shape: f32[2,1,256], index: 3, kind: output, shape index: {0}]   ;;  %s1337_s4 = inlined_call_operand.vmem [shape: f32[2,5,256], index: 4, kind: output, shape index: {1}]  }
   0x1   :  { %12 = vsyncpa [#allocation3 + $0x1], 0 }
   0x2   :  { %13 = vsyncpa [#allocation4], 0 }
   0x3   :  { %15 = vsyncpa [#allocation4 + $0x1], 0  ;;  %s1114_s15 = smov 0   ;;  %s1116_s16 = smov 0  }
   0x4   :  { %s1118_s17 = smov 0   ;;  %s1120_s18 = smov 0  }
   0x5   :  { %s1122_s19 = smov 0   ;;  %s1124_s20 = smov 0  }
   0x6 LB: > { %s874_s21 = sadd.s32 4294967295, %s1082_s20   ;;  %s875_s22 = sadd.s32 4294967294, %s1082_s20   ;;  %s1082_s20 = sphi %s1124_s20, %s21_s20   ;;  %s1078_s19 = sphi %s1122_s19, %s1346_s19   ;;  %s1074_s18 = sphi %s1120_s18, %s1345_s18   ;;  %s1070_s17 = sphi %s1118_s17, %s1344_s17   ;;  %s1066_s16 = sphi %s1116_s16, %s1343_s16   ;;  %s1062_s15 = sphi %s1114_s15, %s1342_s15  }
   0x7   : > { %s33_s23 = sadd.s32 1, %s1078_s19  ;;  %s42_s24 = sadd.s32 1, %s1070_s17 }
   0x8   : > { %p35_p0 = scmp.ge.s32.totalorder %s33_s23, 2  ;;  %p49_p1 = scmp.ne.s32.totalorder %s1070_s17, %s1066_s16 }
   0x9   : > { %p50_p2 = scmp.eq.s32.totalorder %s1082_s20, 0  ;;  %p55_p3 = scmp.ne.s32.totalorder %s1066_s16, %s1062_s15 }
   0xa   : > { %s1348_s23 = smov (%p35_p0, %s33_s23), 0  ;;  %p56_p5 = scmp.eq.s32.totalorder %s874_s21, 0 }
   0xb   : > { %p1155_p4 = por %p50_p2, %p49_p1  ;;  %s37_s26 = ssub.s32 %s1078_s19, %s1348_s23 }
   0xc   : > { %p123_p6 = scmp.eq.s32.totalorder %s874_s21, 1  ;;  %p40_p7 = scmp.eq.s32.totalorder %s37_s26, 0 }
   0xd   : > { %p1161_p8 = por %p56_p5, %p55_p3  ;;  %p129_p10 = scmp.eq.s32.totalorder %s875_s22, 1 }
   0xe   : > { %p1165_p9 = por %p123_p6, %p49_p1  ;;  %p877_p12 = scmp.ge.s32.totalorder %s1082_s20, 2 }
   0xf   : > { %s1170_s29 = scalar_select %p40_p7, %s1070_s17, %s42_s24  }
  0x10   : > { %p1172_p11 = por %p129_p10, %p55_p3  ;;  %p906_p13 = scmp.lt.s32.totalorder %s1082_s20, 2 }
  0x11   : > { %s183_s5 = sand.u32 1, %s1070_s17   ;;  %s892_s7 = sshll.u32 %s1078_s19, 6 }
  0x12   : > { %s878_s6 = sshll.u32 %s183_s5, 6  ;;  %s194_s10 = scalar_lea.hbm %s1333_s0, %s892_s7 }
  0x13   : > { %s187_s11 = scalar_lea.vmem [#allocation2], %s878_s6  ;;  %s195_s13 = sshll.u32 %s194_s10, 4  ;;  %s196_s13 = int_to_ptr.hbm [resolvable:$true] %s195_s13 }
  0x14   : > { %s197_s12 = sshll.u32 %s187_s11, 4  ;;  %p899_p0 = pnand %p906_p13, %p1155_p4  ;;  %s198_s12 = int_to_ptr.vmem [resolvable:$true] %s197_s12 }
  0x15   : > { %p881_p1 = scmp.ge.s32.totalorder %s1082_s20, 1  ;;  %s184_s14 = scalar_lea.sflag [#allocation3], %s183_s5 }
  0x16   : > { %s1084_s21 = smov 256   ;;  %s1085_s22 = smov 16  }
  0x17   : > { %901 = dma.hbm_to_vmem [thread:$0]  (!%p899_p0), %s196_s13, 1024, %s198_s12, %s184_s14, %s1084_s21, %s1084_s21, %s1085_s22  }
  0x18   : > { %p205_p2 = scmp.lt.s32.totalorder %s1082_s20, 3 }
  0x1a   : > { %p206_p3 = pnand %p881_p1, %p205_p2 }
  0x1b   : > { %s1188_s24 = sand.u32 (!%p206_p3), 1, %s1066_s16  }
  0x1c   : > { %209 = sbr.rel (%p206_p3) target bundleno = 237 (0xed), region = 32  ;;  %s882_s26 = sshll.u32 (!%p206_p3), %s1188_s24, 6 }
  0x1d   : > { %s212_s6 = scalar_lea.sflag (!%p206_p3), [#allocation3], %s1188_s24  ;;  %s215_s7 = scalar_lea.vmem (!%p206_p3), [#allocation2], %s882_s26 }
  0x21   : > { %1053 = dma.done.wait (%p1161_p8), %s212_s6, 1024  }
  0x22   : > { %1055 = vsyncadd (%p1161_p8), %s212_s6, 4294966272  ;;  %v1086_v0 = vmov 0   ;;  %vm277_vm0 = vcmask 261120   ;;  %v269_v1 = vld [vmem:[%s215_s7 + $0x30] sm:$0xff]  ;;  %v267_v2 = vld [vmem:[%s215_s7 + $0x20] sm:$0xff]  ;;  %p253_p4 = scmp.lt.s32.totalorder %s1074_s18, 1 }
  0x23   : > { %961 = vset.pattern.permute.xlu0 %v1086_v0  ;;  %v265_v3 = vld [vmem:[%s215_s7 + $0x10] sm:$0xff]  ;;  %v1196_v4 = vand.u32 4294901760, %v269_v1  ;;  %v1198_v5 = vand.u32 4294901760, %v267_v2  ;;  %v263_v7 = vld [vmem:[%s215_s7] sm:$0xff]  ;;  %v270_v11 = vld [vmem:[%s215_s7 + $0x38] sm:$0xff]  ;;  %s883_s14 = sshll.u32 %s1188_s24, 1 }
  0x24   : > { %v1200_v6 = vand.u32 4294901760, %v265_v3  ;;  %v262_v8 = vld [vmem:[%s1334_s1] sm:$0x3f]  ;;  %v1205_v9 = vand.u32 4294901760, %v263_v7  ;;  %v268_v12 = vld [vmem:[%s215_s7 + $0x28] sm:$0xff]  ;;  %v266_v13 = vld [vmem:[%s215_s7 + $0x18] sm:$0xff] }
  0x25   : > { %v279_v10 = vsel %vm277_vm0, %v262_v8, 0  ;;  %v323_v14 = vsub.f32 %v269_v1, %v1196_v4  ;;  %294 = vmatpush.msra.mxu0 %v1196_v4  ;;  %v329_v15 = vsub.f32 %v267_v2, %v1198_v5  ;;  %394 = vmatpush.msra.mxu3 %v1196_v4  ;;  %v264_v18 = vld [vmem:[%s215_s7 + $0x8] sm:$0xff]  ;;  %v271_v19 = vld [vmem:[%s1335_s2] sm:$0x3f]  ;;  %v1222_v21 = vand.u32 4294901760, %v270_v11  ;;  %s254_s9 = scalar_select %p253_p4, %s1074_s18, 1 }
  0x26   : > { %v1212_v16 = vsub.f32 %v265_v3, %v1200_v6  ;;  %v1214_v17 = vand.u32 4294901760, %v279_v10  ;;  %v1220_v20 = vsub.f32 %v263_v7, %v1205_v9  ;;  %v1224_v22 = vand.u32 4294901760, %v268_v12  ;;  %274 = vperm.xlu0 %961, %v271_v19   ;;  %s889_s21 = sshll.u32 %s1074_s18, 1  ;;  %s238_s7 = scalar_lea.vmem [#allocation5], %s883_s14 }
  0x27   : > { %v1226_v23 = vand.u32 4294901760, %v266_v13  ;;  %365 = vmatpush.msra.mxu2 %v323_v14  ;;  %296 = vmatpush.msra.mxu0 %v1198_v5  ;;  %v324_v24 = vand.u32 4294901760, %v323_v14  ;;  %v330_v25 = vand.u32 4294901760, %v329_v15  ;;  %v508_v28 = vsub.f32 %v270_v11, %v1222_v21  ;;  %s893_s10 = sshll.u32 %s254_s9, 4  ;;  %s745_s6 = scalar_lea.hbm %s1336_s3, %s889_s21 }
  0x28   : > { %v1230_v26 = vsub.f32 %v279_v10, %v1214_v17  ;;  %v336_v27 = vand.u32 4294901760, %v1212_v16  ;;  %396 = vmatpush.msra.mxu3 %v1198_v5  ;;  %v342_v29 = vand.u32 4294901760, %v1220_v20  ;;  %v1237_v30 = vsub.f32 %v268_v12, %v1224_v22  ;;  %s1290_s13 = scalar_lea.vmem %s1337_s4, %s893_s10  ;;  %s747_s25 = sshll.u32 %s238_s7, 4  ;;  %s748_s25 = int_to_ptr.vmem [resolvable:$true] %s747_s25 }
  0x29   : > { %v1239_v31 = vand.u32 4294901760, %v264_v18  ;;  %368 = vmatpush.msra.mxu2 %v329_v15  ;;  %v325_v32 = vsub.f32 %v323_v14, %v324_v24  ;;  %298 = vmatpush.msra.mxu0 %v1200_v6  ;;  %v331_v33 = vsub.f32 %v329_v15, %v330_v25  ;;  %v509_v36 = vand.u32 4294901760, %v508_v28  ;;  %s749_s5 = sshll.u32 %s745_s6, 4  ;;  %s724_s18 = scalar_lea.sflag [#allocation4], %s1188_s24  ;;  %s750_s5 = int_to_ptr.hbm [resolvable:$true] %s749_s5 }
  0x2a   : > { %v337_v34 = vsub.f32 %v1212_v16, %v336_v27  ;;  %v1244_v35 = vand.u32 4294901760, %v1230_v26  ;;  %398 = vmatpush.msra.mxu3 %v1200_v6  ;;  %v515_v37 = vand.u32 4294901760, %v1237_v30  ;;  %v520_v38 = vsub.f32 %v266_v13, %v1226_v23  ;;  %s1014_s27 = sshra.s32 %s750_s5, 4  ;;  %s1020_s11 = scalar_lea.hbm %s1336_s3, 4  ;;  %s1015_s27 = int_to_ptr.hbm [resolvable:$true] %s1014_s27 }
  0x2b   : > { %v326_v39 = vand.u32 4294901760, %v325_v32  ;;  %371 = vmatpush.msra.mxu2 %v1212_v16  ;;  %v332_v40 = vand.u32 4294901760, %v331_v33  ;;  %300 = vmatpush.msra.mxu0 %v1205_v9  ;;  %v343_v42 = vsub.f32 %v1220_v20, %v342_v29  ;;  %v510_v43 = vsub.f32 %v508_v28, %v509_v36  ;;  %s1016_s8 = scalar_lea.hbm %s1015_s27, 2  ;;  %p1021_p8 = scmp.lt.s32.totalorder %s1015_s27, %s1336_s3 }
  0x2c   : > { %v304_v41 = vsub.f32 %v1230_v26, %v1244_v35  ;;  %400 = vmatpush.msra.mxu3 %v1205_v9  ;;  %v516_v44 = vsub.f32 %v1237_v30, %v515_v37  ;;  %v521_v45 = vand.u32 4294901760, %v520_v38  ;;  %v338_v46 = vand.u32 4294901760, %v337_v34  ;;  %p1017_p5 = scmp.ne.s32.totalorder %s1015_s27, %s1016_s8  ;;  %p1022_p10 = scmp.lt.s32.totalorder %s1020_s11, %s1016_s8 }
  0x2d   : > { %423 = vmatpush.msrb.mxu0 %v324_v24  ;;  %327 = vmatpush.msra.mxu1 %v326_v39  ;;  %v526_v48 = vsub.f32 %v264_v18, %v1239_v31  ;;  %v511_v49 = vand.u32 4294901760, %v510_v43  ;;  %v344_v52 = vand.u32 4294901760, %v343_v42  ;;  %v695_v19 = vlaneseq }
  0x2e   : > { %374 = vmatpush.msra.mxu2 %v1220_v20  ;;  %v305_v47 = vand.u32 4294901760, %v304_v41  ;;  %404 = vmatmul.f32.vlgmr.msra.gmra.mxu3 %v1244_v35  ;;  %v517_v50 = vand.u32 4294901760, %v516_v44  ;;  %v522_v51 = vsub.f32 %v520_v38, %v521_v45  ;;  %v1088_v34 = vmov -1.5707964   ;;  %p1018_p6 = pnand %p1017_p5, %p1165_p9  ;;  %p1023_p13 = por %p1022_p10, %p1021_p8 }
  0x2f   : > { %377 = vmatmul.f32.vlgmr.msra.gmra.mxu2 %v1230_v26  ;;  %333 = vmatpush.msra.mxu1 %v332_v40  ;;  %v527_v53 = vand.u32 4294901760, %v526_v48  ;;  %vm692_vm10 = vcmask 1040384   ;;  %vm697_vm11 = vcmp.lt.s32.totalorder %v695_v19, 256 }
  0x30   : > { %479 = vmatpush.msrb.mxu2 %v1222_v21  ;;  %306 = vmatmul.f32.vlgmr.msra.gmra.mxu0 %v305_v47  ;;  %v523_v55 = vand.u32 4294901760, %v522_v51  ;;  %p1019_p7 = pneg %p1018_p6 }
  0x31   : > { %512 = vmatpush.msrb.mxu3 %v511_v49  ;;  %339 = vmatpush.msra.mxu1 %v338_v46  ;;  %v528_v54 = vsub.f32 %v526_v48, %v527_v53 }
  0x32   : > { %481 = vmatpush.msrb.mxu2 %v1224_v22  ;;  %427 = vmatpush.msrb.mxu0 %v330_v25  ;;  %p1024_p0 = pnand %p1023_p13, %p1019_p7 }
  0x33   : > { %518 = vmatpush.msrb.mxu3 %v517_v50  ;;  %345 = vmatpush.msra.mxu1 %v344_v52  ;;  %v529_v56 = vand.u32 4294901760, %v528_v54 }
  0x34   : > { %483 = vmatpush.msrb.mxu2 %v1226_v23  ;;  %347 = vmatmul.f32.vlgmr.msra.gmra.mxu1 %v1214_v17 }
  0x35   : > { %431 = vmatpush.msrb.mxu0 %v336_v27  ;;  %454 = vmatpush.msrb.mxu1 %v1196_v4 }
  0x36   : > { %485 = vmatpush.msrb.mxu2 %v1239_v31  ;;  %524 = vmatpush.msrb.mxu3 %v523_v55 }
  0x37   : > { %435 = vmatpush.msrb.mxu0 %v342_v29  ;;  %456 = vmatpush.msrb.mxu1 %v1198_v5 }
  0x38   : > { %491 = vmatmul.f32.vlgmr.msrb.gmra.mxu2 %v305_v47  ;;  %530 = vmatpush.msrb.mxu3 %v529_v56 }
  0x39   : > { %608 = vmatpush.msra.mxu2 %v509_v36  ;;  %458 = vmatpush.msrb.mxu1 %v1200_v6 }
  0x3a   : > { %437 = vmatmul.f32.vlgmr.msrb.gmra.mxu0 %v1214_v17  ;;  %532 = vmatmul.f32.vlgmr.msrb.gmra.mxu3 %v1214_v17 }
  0x3b   : > { %550 = vmatpush.msra.mxu0 %v508_v28  ;;  %460 = vmatpush.msrb.mxu1 %v1205_v9  ;;  %v1087_v28 = vmov 3.1415927  }
  0x3c   : > { %612 = vmatpush.msra.mxu2 %v515_v37  ;;  %639 = vmatpush.msra.mxu3 %v1222_v21 }
  0x3d   : > { %462 = vmatmul.f32.vlgmr.msrb.gmra.mxu1 %v1214_v17  ;;  %553 = vmatpush.msra.mxu0 %v1237_v30 }
  0x3e   : > { %579 = vmatpush.msra.mxu1 %v1222_v21  ;;  %616 = vmatpush.msra.mxu2 %v521_v45 }
  0x3f   : > { %641 = vmatpush.msra.mxu3 %v1224_v22  ;;  %556 = vmatpush.msra.mxu0 %v520_v38 }
  0x40   : > { %581 = vmatpush.msra.mxu1 %v1224_v22  ;;  %620 = vmatpush.msra.mxu2 %v527_v53 }
  0x41   : > { %643 = vmatpush.msra.mxu3 %v1226_v23  ;;  %559 = vmatpush.msra.mxu0 %v526_v48 }
  0x42   : > { %583 = vmatpush.msra.mxu1 %v1226_v23  ;;  %622 = vmatmul.f32.vlgmr.msra.gmra.mxu2 %v1214_v17  ;;  %v701_v23 = vshrl.u32 %v695_v19, 7 }
  0x43   : > { %645 = vmatpush.msra.mxu3 %v1239_v31  ;;  %562 = vmatmul.f32.vlgmr.msra.gmra.mxu0 %v1230_v26 }
  0x44   : > { %585 = vmatpush.msra.mxu1 %v1239_v31  ;;  %647 = vmatmul.f32.vlgmr.msra.gmra.mxu3 %v1214_v17  ;;  %vm702_vm1 = vcmp.lt.s32.totalorder %v701_v23, 4 }
  0x45   : > { %589 = vmatmul.f32.vlgmr.msra.gmra.mxu1 %v1244_v35  ;;  %v703_v29 = vsel %vm702_vm1, 512.0, %v1087_v28  ;;  %v704_v35 = vsel %vm702_vm1, 0.0, %v1088_v34 }
  0x46   : > { %v706_v37 = vrot.slane %v703_v29, 7  ;;  %v711_v40 = vrot.slane %v704_v35, 7 }
  0x98   : > { %v275_v57 = vpop.permute.xlu0 %274 }
  0xad   : > { %v307_v58 = vpop.f32.mrf.mxu0 }
  0xae   : > { %v308_v59 = vadd.f32 %v307_v58, %v275_v57 }
  0xb1   : > { %v348_v60 = vpop.f32.mrf.mxu1  ;;  %v405_v63 = vpop.f32.mrf.mxu3 }
  0xb2   : > { %v378_v61 = vpop.f32.mrf.mxu2  ;;  %v349_v62 = vadd.f32 %v348_v60, %v308_v59 }
  0xb4   : > { %v379_v0 = vadd.f32 %v378_v61, %v349_v62 }
  0xb6   : > { %v406_v1 = vadd.f32 %v405_v63, %v379_v0 }
  0xb7   : > { %v438_v2 = vpop.f32.mrf.mxu0 }
  0xb8   : > { %v439_v3 = vadd.f32 %v438_v2, %v406_v1 }
  0xba   : > { %v463_v4 = vpop.f32.mrf.mxu1 }
  0xbb   : > { %v464_v5 = vadd.f32 %v463_v4, %v439_v3  ;;  %v492_v6 = vpop.f32.mrf.mxu2 }
  0xbc   : > { %v493_v7 = vadd.f32 %v492_v6, %v275_v57 }
  0xbd   : > { %v886_v8 = vmul.f32 -1.442695, %v464_v5  ;;  %v533_v9 = vpop.f32.mrf.mxu3 }
  0xbe   : > { %v534_v10 = vadd.f32 %v533_v9, %v493_v7 }
  0xbf   : > { %962 = vpow2.f32 %v886_v8 }
  0xc0   : > { %v563_v11 = vpop.f32.mrf.mxu0 }
  0xc1   : > { %v564_v12 = vadd.f32 %v563_v11, %v534_v10 }
  0xc2   : > { %v590_v13 = vpop.f32.mrf.mxu1 }
  0xc3   : > { %v591_v14 = vadd.f32 %v590_v13, %v564_v12 }
  0xc5   : > { %v963_v15 = vpop.eup %962  ;;  %v623_v17 = vpop.f32.mrf.mxu2 }
  0xc6   : > { %v657_v16 = vadd.f32 1.0, %v963_v15  ;;  %v624_v18 = vadd.f32 %v623_v17, %v591_v14 }
  0xc7   : > { %v648_v20 = vpop.f32.mrf.mxu3 }
  0xc8   : > { %964 = vrcp.f32 %v657_v16  ;;  %v649_v21 = vadd.f32 %v648_v20, %v624_v18  ;;  %v670_v27 = vand.u32 2147483648, %v657_v16  ;;  %v668_v32 = vand.u32 2147483647, %v657_v16 }
  0xc9   : > { %vm664_vm3 = vweird.f32 %v657_v16 }
  0xca   : > { %v887_v22 = vmul.f32 -1.442695, %v649_v21  ;;  %v671_v38 = vor.u32 1.1754944e-38, %v670_v27  ;;  %vm669_vm5 = vcmp.eq.f32.partialorder %v668_v32, 8.507059e+37 }
  0xcc   : > { %966 = vpow2.f32 %v887_v22 }
  0xce   : > { %v965_v24 = vpop.eup %964 }
  0xcf   : > { %v660_v25 = vmul.f32 %v965_v24, %v657_v16  ;;  %vm665_vm2 = vweird.f32 %v965_v24 }
  0xd0   : > { %vm666_vm4 = vmor %vm664_vm3, %vm665_vm2 }
  0xd1   : > { %v661_v26 = vsub.f32 1.0, %v660_v25 }
  0xd2   : > { %v967_v30 = vpop.eup %966 }
  0xd3   : > { %v662_v31 = vmul.f32 %v965_v24, %v661_v26  ;;  %v658_v33 = vadd.f32 1.0, %v967_v30 }
  0xd5   : > { %v663_v36 = vadd.f32 %v965_v24, %v662_v31  ;;  %968 = vrcp.f32 %v658_v33  ;;  %v685_v48 = vand.u32 2147483648, %v658_v33  ;;  %v683_v50 = vand.u32 2147483647, %v658_v33 }
  0xd6   : > { %vm679_vm7 = vweird.f32 %v658_v33 }
  0xd7   : > { %v667_v39 = vsel %vm666_vm4, %v965_v24, %v663_v36  ;;  %v686_v52 = vor.u32 1.1754944e-38, %v685_v48  ;;  %vm684_vm9 = vcmp.eq.f32.partialorder %v683_v50, 8.507059e+37 }
  0xd8   : > { %v672_v41 = vsel %vm669_vm5, %v671_v38, %v667_v39 }
  0xd9   : > { %v708_v42 = vmul.f32 %v706_v37, %v672_v41 }
  0xdb   : > { %v713_v43 = vadd.f32 %v711_v40, %v708_v42  ;;  %v969_v44 = vpop.eup %968 }
  0xdc   : > { %v675_v45 = vmul.f32 %v969_v44, %v658_v33  ;;  %vm680_vm6 = vweird.f32 %v969_v44 }
  0xdd   : > { %v717_v46 = vrot.slane %v713_v43, 1  ;;  %vm681_vm8 = vmor %vm679_vm7, %vm680_vm6 }
  0xde   : > { %v676_v47 = vsub.f32 1.0, %v675_v45 }
  0xdf   : > { %721 = vst [vmem:[%s1290_s13] sm:$0x1f] %v717_v46 }
  0xe0   : > { %v677_v49 = vmul.f32 %v969_v44, %v676_v47 }
  0xe2   : > { %v678_v51 = vadd.f32 %v969_v44, %v677_v49 }
  0xe4   : > { %v682_v53 = vsel %vm681_vm8, %v969_v44, %v678_v51 }
  0xe5   : > { %v687_v54 = vsel %vm684_vm9, %v686_v52, %v682_v53 }
  0xe6   : > { %v691_v55 = vrot.slane %v687_v54, 7  ;;  %v709_v56 = vmul.f32 %v706_v37, %v687_v54 }
  0xe8   : > { %v693_v57 = vsel %vm692_vm10, %v672_v41, %v691_v55  ;;  %v714_v58 = vadd.f32 %v711_v40, %v709_v56 }
  0xe9   : > { %699 = vst.msk [vmem:[%s238_s7] sm:$0x3] %vm697_vm11, %v693_v57 }
  0xea   : > { %v718_v59 = vrot.slane %v714_v58, 1 }
  0xeb   : > { %1027 = shalt.err (!%p1024_p0)
}
  0xec   : > { %896 = dma.vmem_to_hbm [thread:$0]  (%p1165_p9), %s748_s25, 32, %s750_s5, %s724_s18   ;;  %722 = vst [vmem:[%s1290_s13 + $0x8] sm:$0x1f] %v718_v59 }
  0xed PF: > { %s765_s24 = sand.u32 1, %s1062_s15   ;;  %p903_p1 = pnand %p877_p12, %p1172_p11 }
  0xee   : > { %s766_s21 = scalar_lea.sflag [#allocation4], %s765_s24 }
  0xef   : > { %p904_p2 = pneg %p903_p1 }
  0xf1   : > { %1057 = dma.done.wait (%p904_p2), %s766_s21, 32  }
  0xf2   : > { %1059 = vsyncadd (%p904_p2), %s766_s21, 4294967264  ;;  %s21_s20 = sadd.s32 1, %s1082_s20   ;;  %s1342_s15 = smov %s1066_s16 }
  0xf3   : > { %p18_p3 = scmp.ge.s32.totalorder %s21_s20, 4   ;;  %s1343_s16 = smov %s1070_s17 }
  0xf4   : > { %s1344_s17 = smov %s1170_s29  ;;  %s1345_s18 = smov %s1078_s19 }
  0xf5   : > { %s1346_s19 = smov %s1348_s23  ;;  %20 = sbr.rel (!%p18_p3) target bundleno = 6 (0x6), region = 89 }
  0xfa   :  { %784 = vsyncpa [#allocation3], 1 }
  0xfb   :  { %786 = vsyncpa [#allocation3 + $0x1], 1 }
  0xfc   :  { %787 = vsyncpa [#allocation4], 1 }
  0xfd   :  { %789 = vsyncpa [#allocation4 + $0x1], 1 }

</bundles_post_ra>
